<compile_context>
chip_gen: v7x
topology: tpu7x:2x2x1
jax: 0.10.0
libtpu: 0.0.40
codegen_flags: <defaults>
</compile_context>

<pallas_src>
import functools

import jax
import jax.numpy as jnp
from jax import lax
from jax.experimental import pallas as pl
from jax.experimental.pallas import tpu as pltpu


# ----------------------------------------------------------------------------
# Small helpers
# ----------------------------------------------------------------------------
def _round_up(v, m):
    return (v + m - 1) // m * m


def _cdiv(a, b):
    return (a + b - 1) // b


def _sublane_align(dtype):
    # f32 -> 8 rows, bf16 -> 16, int8/fp8 -> 32 (sub-32-bit dtypes pack along sublanes).
    return max(8, 32 // max(1, jnp.dtype(dtype).itemsize))


def _fit_tile(dim, target, align):
    """Largest multiple of `align` that is <= min(target, dim); `dim` itself if dim<=align
    (a block equal to the full array dim is always a legal block shape)."""
    if dim <= align:
        return dim
    t = min(int(target), dim)
    t = (t // align) * align
    return max(t, align)


@functools.lru_cache(maxsize=None)
def _vmem_limit_bytes():
    """Per-generation VMEM limit: ~96 MiB on 128-MiB parts (v5e/v6e), ~40 MiB on v7x."""
    cap = 64 * 1024 * 1024
    try:
        info = pltpu.get_tpu_info()
        cap = int(getattr(info, "vmem_capacity_bytes", cap))
    except Exception:
        pass
    if cap >= 128 * 1024 * 1024:
        return 96 * 1024 * 1024
    return 40 * 1024 * 1024


# ----------------------------------------------------------------------------
# Linear (+ fused bias & activation): LinearBlock core (norm=None path).
# ----------------------------------------------------------------------------
def _linear_kernel(x_ref, w_ref, b_ref, o_ref, acc_ref, *, act, slope, kdim, tk, mask_k):
    k = pl.program_id(2)

    @pl.when(k == 0)
    def _():
        acc_ref[...] = jnp.zeros_like(acc_ref)

    x = x_ref[...]
    w = w_ref[...]
    if mask_k:
        # Partial last K block: zero both operands' tail so garbage (possibly NaN)
        # never reaches the accumulator.
        col = k * tk + lax.broadcasted_iota(jnp.int32, x.shape, 1)
        x = jnp.where(col < kdim, x, jnp.zeros_like(x))
        row = k * tk + lax.broadcasted_iota(jnp.int32, w.shape, 0)
        w = jnp.where(row < kdim, w, jnp.zeros_like(w))

    acc_ref[...] += jnp.dot(x, w, preferred_element_type=jnp.float32)

    @pl.when(k == pl.num_programs(2) - 1)
    def _():
        y = acc_ref[...] + b_ref[...].astype(jnp.float32)
        if act == "relu":
            y = jnp.maximum(y, 0.0)
        elif act == "lrelu":
            y = jnp.where(y >= 0.0, y, slope * y)
        elif act == "tanh":
            y = jnp.tanh(y)
        o_ref[...] = y.astype(o_ref.dtype)


def _linear_tiles(M, K, N, in_itemsize, out_itemsize, vmem_limit):
    m_align = max(8, 32 // max(1, in_itemsize))
    tn = _fit_tile(N, 512, 128)      # MXU-friendly output tile
    tk = _fit_tile(K, 512, 128)      # reduction tile
    budget = int(vmem_limit * 0.55)  # headroom under the compiler limit
    # Double-buffered W + bias blocks are "fixed"; x/out blocks + f32 acc scale with tm.
    fixed = 2 * (tk * tn + tn) * in_itemsize
    per_row = 2 * tk * in_itemsize + 2 * tn * out_itemsize + tn * 4
    avail = max(budget - fixed, per_row * m_align)
    tm = _fit_tile(M, min(avail // per_row, 1024), m_align)
    # v7x has 2 TensorCores: prefer >= 2 parallel grid steps when M allows it.
    if _cdiv(M, tm) * _cdiv(N, tn) < 2 and M > m_align:
        tm = _fit_tile(M, max(m_align, _round_up(_cdiv(M, 2), m_align)), m_align)
    return tm, tk, tn


def linear_block_forward(x, w, b, relu=None, *, compute_dtype=None):
    """LinearBlock forward with norm=None: y = x @ w + b, then optional activation.

    w is (nch_in, nch_out), i.e. the transpose of torch.nn.Linear.weight.
    relu: None/'none' -> identity, 'tanh' -> tanh, 0 -> ReLU, >0 -> LeakyReLU(relu).
    compute_dtype: optionally cast x/w (e.g. jnp.bfloat16) to feed the MXU natively;
    accumulation stays f32 and the output keeps x's original dtype.
    """
    M, K = x.shape
    K2, N = w.shape
    assert K == K2 and b.shape == (N,)

    if relu is None or relu == "none":
        act, slope = "id", 0.0
    elif relu == "tanh":
        act, slope = "tanh", 0.0
    elif isinstance(relu, (int, float)) and float(relu) == 0.0:
        act, slope = "relu", 0.0
    elif isinstance(relu, (int, float)) and float(relu) > 0.0:
        act, slope = "lrelu", float(relu)
    else:
        raise ValueError(f"unsupported relu spec: {relu!r}")

    out_dtype = x.dtype
    if compute_dtype is not None:
        x = x.astype(compute_dtype)
        w = w.astype(compute_dtype)

    in_itemsize = jnp.dtype(x.dtype).itemsize
    out_itemsize = jnp.dtype(out_dtype).itemsize
    vmem_limit = _vmem_limit_bytes()
    tm, tk, tn = _linear_tiles(M, K, N, in_itemsize, out_itemsize, vmem_limit)
    nm, nn, nk = _cdiv(M, tm), _cdiv(N, tn), _cdiv(K, tk)
    mask_k = (K % tk) != 0

    b2d = b.reshape(1, N)

    out = pl.pallas_call(
        functools.partial(_linear_kernel, act=act, slope=slope,
                          kdim=K, tk=tk, mask_k=mask_k),
        out_shape=jax.ShapeDtypeStruct((M, N), out_dtype),
        grid_spec=pltpu.PrefetchScalarGridSpec(
            num_scalar_prefetch=0,
            grid=(nm, nn, nk),
            in_specs=[
                pl.BlockSpec((tm, tk), lambda i, j, k: (i, k)),
                pl.BlockSpec((tk, tn), lambda i, j, k: (k, j)),
                pl.BlockSpec((1, tn), lambda i, j, k: (0, j)),
            ],
            out_specs=pl.BlockSpec((tm, tn), lambda i, j, k: (i, j)),
            scratch_shapes=[pltpu.VMEM((tm, tn), jnp.float32)],
        ),
        compiler_params=pltpu.CompilerParams(
            dimension_semantics=("parallel", "parallel", "arbitrary"),
            vmem_limit_bytes=vmem_limit,
        ),
        cost_estimate=pl.CostEstimate(
            flops=2 * M * K * N,
            transcendentals=M * N if act == "tanh" else 0,
            bytes_accessed=(M * K + K * N + N) * in_itemsize + M * N * out_itemsize,
        ),
    )(x, w, b2d)
    return out


# ----------------------------------------------------------------------------
# AdaptiveInstanceNorm2d (Norm2d('adain') option of LinearBlock).
# ----------------------------------------------------------------------------
def _adain_fused_kernel(x_ref, w_ref, b_ref, o_ref, *, eps, inv_n):
    # Whole spatial row in VMEM: numerically-safe two-pass (mean, then centered var).
    x = x_ref[...].astype(jnp.float32)
    mean = jnp.sum(x, axis=1, keepdims=True) * inv_n
    centered = x - mean
    var = jnp.sum(centered * centered, axis=1, keepdims=True) * inv_n
    inv_std = lax.rsqrt(var + eps)
    scale = w_ref[...].astype(jnp.float32) * inv_std
    o_ref[...] = (centered * scale + b_ref[...].astype(jnp.float32)).astype(o_ref.dtype)


def _adain_stats_kernel(x_ref, w_ref, b_ref, scale_ref, shift_ref, *,
                        eps, inv_n, hw, ts, mask_hw):
    # Grid: (row tiles, spatial tiles); spatial axis is the reduction ('arbitrary').
    j = pl.program_id(1)

    @pl.when(j == 0)
    def _():
        scale_ref[...] = jnp.zeros_like(scale_ref)   # running sum
        shift_ref[...] = jnp.zeros_like(shift_ref)   # running sum of squares

    x = x_ref[...].astype(jnp.float32)
    if mask_hw:
        col = j * ts + lax.broadcasted_iota(jnp.int32, x.shape, 1)
        x = jnp.where(col < hw, x, 0.0)
    scale_ref[...] += jnp.sum(x, axis=1, keepdims=True)
    shift_ref[...] += jnp.sum(x * x, axis=1, keepdims=True)

    @pl.when(j == pl.num_programs(1) - 1)
    def _():
        s = scale_ref[...]
        ssq = shift_ref[...]
        mean = s * inv_n
        # TODO(synk): streaming E[x^2]-mean^2 can lose precision if |mean| >> std.
        var = jnp.maximum(ssq * inv_n - mean * mean, 0.0)
        scale = w_ref[...].astype(jnp.float32) * lax.rsqrt(var + eps)
        scale_ref[...] = scale
        shift_ref[...] = b_ref[...].astype(jnp.float32) - mean * scale


def _adain_apply_kernel(x_ref, scale_ref, shift_ref, o_ref):
    x = x_ref[...].astype(jnp.float32)
    o_ref[...] = (x * scale_ref[...] + shift_ref[...]).astype(o_ref.dtype)


def adaptive_instance_norm_2d(x, weight, bias, eps=1e-5, *, block_budget_bytes=None):
    """AdaIN forward. x: (B, C, H, W); weight, bias: (B*C,). Returns (B, C, H, W)."""
    B, C, H, W = x.shape
    BC, HW = B * C, H * W
    assert weight.shape == (BC,) and bias.shape == (BC,)

    itemsize = jnp.dtype(x.dtype).itemsize
    align = _sublane_align(x.dtype)
    inv_n = 1.0 / float(HW)
    eps = float(eps)
    vmem_limit = _vmem_limit_bytes()
    budget = (int(block_budget_bytes) if block_budget_bytes is not None
              else int(vmem_limit * 0.55))

    x2d = x.reshape(BC, HW)                       # free row-major collapse, no pad
    w2d = weight.reshape(BC, 1).astype(jnp.float32)
    b2d = bias.reshape(BC, 1).astype(jnp.float32)

    hw_lanes = _round_up(HW, 128)                 # VMEM lane footprint of a full row
    per_row = 4 * hw_lanes * itemsize             # double-buffered x-in + out blocks
    rows_fit = budget // per_row

    if rows_fit >= align:
        # -------- fused single-pass path: full spatial row per block --------
        tr = _fit_tile(BC, min(int(rows_fit), 1024), align)
        if _cdiv(BC, tr) < 2 and BC > align:      # keep both v7x TCs busy
            tr = _fit_tile(BC, max(align, _round_up(_cdiv(BC, 2), align)), align)
        nr = _cdiv(BC, tr)

        out2d = pl.pallas_call(
            functools.partial(_adain_fused_kernel, eps=eps, inv_n=inv_n),
            out_shape=jax.ShapeDtypeStruct((BC, HW), x.dtype),
            grid_spec=pltpu.PrefetchScalarGridSpec(
                num_scalar_prefetch=0,
                grid=(nr,),
                in_specs=[
                    pl.BlockSpec((tr, HW), lambda i: (i, 0)),   # full-dim lane block
                    pl.BlockSpec((tr, 1), lambda i: (i, 0)),    # per-tile weight
                    pl.BlockSpec((tr, 1), lambda i: (i, 0)),    # per-tile bias
                ],
                out_specs=pl.BlockSpec((tr, HW), lambda i: (i, 0)),
            ),
            compiler_params=pltpu.CompilerParams(
                dimension_semantics=("parallel",),
                vmem_limit_bytes=vmem_limit,
            ),
            cost_estimate=pl.CostEstimate(
                flops=8 * BC * HW, transcendentals=0,
                bytes_accessed=2 * BC * HW * itemsize),
        )(x2d, w2d, b2d)
    else:
        # -------- two-pass path for very large H*W: spatial-split reduction --------
        tr_max = budget // (4 * 128 * itemsize)
        tr = _fit_tile(BC, max(align, min(int(tr_max), 128)), align)
        if _cdiv(BC, tr) < 2 and BC > align:
            tr = _fit_tile(BC, max(align, _round_up(_cdiv(BC, 2), align)), align)
        ts = max(128, (budget // (4 * tr * itemsize)) // 128 * 128)
        ts = min(ts, hw_lanes)
        nr, ns = _cdiv(BC, tr), _cdiv(HW, ts)
        mask_hw = (HW % ts) != 0

        scales, shifts = pl.pallas_call(
            functools.partial(_adain_stats_kernel, eps=eps, inv_n=inv_n,
                              hw=HW, ts=ts, mask_hw=mask_hw),
            out_shape=(jax.ShapeDtypeStruct((BC, 1), jnp.float32),
                       jax.ShapeDtypeStruct((BC, 1), jnp.float32)),
            grid_spec=pltpu.PrefetchScalarGridSpec(
                num_scalar_prefetch=0,
                grid=(nr, ns),
                in_specs=[
                    pl.BlockSpec((tr, ts), lambda i, j: (i, j)),
                    pl.BlockSpec((tr, 1), lambda i, j: (i, 0)),
                    pl.BlockSpec((tr, 1), lambda i, j: (i, 0)),
                ],
                out_specs=[pl.BlockSpec((tr, 1), lambda i, j: (i, 0)),
                           pl.BlockSpec((tr, 1), lambda i, j: (i, 0))],
            ),
            compiler_params=pltpu.CompilerParams(
                dimension_semantics=("parallel", "arbitrary"),
                vmem_limit_bytes=vmem_limit,
            ),
            cost_estimate=pl.CostEstimate(
                flops=3 * BC * HW, transcendentals=0,
                bytes_accessed=BC * HW * itemsize),
        )(x2d, w2d, b2d)

        out2d = pl.pallas_call(
            _adain_apply_kernel,
            out_shape=jax.ShapeDtypeStruct((BC, HW), x.dtype),
            grid_spec=pltpu.PrefetchScalarGridSpec(
                num_scalar_prefetch=0,
                grid=(nr, ns),
                in_specs=[
                    pl.BlockSpec((tr, ts), lambda i, j: (i, j)),
                    pl.BlockSpec((tr, 1), lambda i, j: (i, 0)),
                    pl.BlockSpec((tr, 1), lambda i, j: (i, 0)),
                ],
                out_specs=pl.BlockSpec((tr, ts), lambda i, j: (i, j)),
            ),
            compiler_params=pltpu.CompilerParams(
                dimension_semantics=("parallel", "parallel"),
                vmem_limit_bytes=vmem_limit,
            ),
            cost_estimate=pl.CostEstimate(
                flops=2 * BC * HW, transcendentals=0,
                bytes_accessed=2 * BC * HW * itemsize),
        )(x2d, scales, shifts)

    return out2d.reshape(B, C, H, W)


# ----------------------------------------------------------------------------
# References
# ----------------------------------------------------------------------------
def _linear_ref(x, w, b, relu=None):
    y = jnp.dot(x.astype(jnp.float32), w.astype(jnp.float32),
                precision=lax.Precision.HIGHEST) + b.astype(jnp.float32)
    if relu == "tanh":
        y = jnp.tanh(y)
    elif isinstance(relu, (int, float)) and float(relu) == 0.0:
        y = jnp.maximum(y, 0.0)
    elif isinstance(relu, (int, float)) and float(relu) > 0.0:
        y = jnp.where(y >= 0.0, y, float(relu) * y)
    return y.astype(x.dtype)


def _adain_ref(x, weight, bias, eps=1e-5):
    B, C, H, W = x.shape
    xf = x.reshape(B * C, H * W).astype(jnp.float32)
    mean = jnp.mean(xf, axis=1, keepdims=True)
    var = jnp.mean((xf - mean) ** 2, axis=1, keepdims=True)
    out = (xf - mean) / jnp.sqrt(var + eps) * weight[:, None] + bias[:, None]
    return out.reshape(B, C, H, W).astype(x.dtype)


if __name__ == "__main__":
    key = jax.random.PRNGKey(0)
    k1, k2, k3, k4, k5, k6, k7, k8 = jax.random.split(key, 8)

    # 1) LinearBlock(32, 64, norm=None, relu=0): Linear + ReLU (f32).
    M, K, N = 8, 32, 64
    x = jax.random.normal(k1, (M, K), dtype=jnp.float32)
    w = jax.random.normal(k2, (K, N), dtype=jnp.float32) * 0.1   # = torch Linear.weight.T
    b = jax.random.normal(k3, (N,), dtype=jnp.float32)
    y = jax.block_until_ready(linear_block_forward(x, w, b, relu=0.0))
    y_ref = _linear_ref(x, w, b, relu=0.0)
    assert y.shape == (M, N)
    assert jnp.allclose(y, y_ref, atol=2e-2, rtol=2e-2)

    # 2) Larger layer: exercises K-tiling (+tail mask), f32 accumulator and bf16 MXU feed.
    M2, K2, N2 = 16, 640, 256
    x2 = jax.random.normal(k4, (M2, K2), dtype=jnp.float32)
    w2 = jax.random.normal(k5, (K2, N2), dtype=jnp.float32) * (1.0 / K2 ** 0.5)
    b2 = jax.random.normal(k6, (N2,), dtype=jnp.float32)
    y2 = jax.block_until_ready(
        linear_block_forward(x2, w2, b2, relu=0.2, compute_dtype=jnp.bfloat16))
    y2_ref = _linear_ref(x2.astype(jnp.bfloat16).astype(jnp.float32),
                         w2.astype(jnp.bfloat16).astype(jnp.float32), b2, relu=0.2)
    assert y2.shape == (M2, N2)
    assert jnp.allclose(y2, y2_ref, atol=2e-2, rtol=2e-2)

    # 3) Norm2d('adain') option: fused single-pass path, 128-aligned spatial.
    B, C, H, W = 2, 4, 16, 16
    xn = jax.random.normal(k7, (B, C, H, W), dtype=jnp.float32)
    aw = jax.random.normal(k8, (B * C,), dtype=jnp.float32)
    ab = jax.random.normal(k1, (B * C,), dtype=jnp.float32)
    out = jax.block_until_ready(adaptive_instance_norm_2d(xn, aw, ab))
    ref = _adain_ref(xn, aw, ab)
    assert out.shape == (B, C, H, W)
    assert jnp.allclose(out, ref, atol=1e-3, rtol=1e-3)

    # 3b) Fused path with ragged rows/lanes (BC=15, HW=360) — no host-side padding.
    B3, C3, H3, W3 = 3, 5, 18, 20
    xr = jax.random.normal(k2, (B3, C3, H3, W3), dtype=jnp.float32)
    awr = jax.random.normal(k3, (B3 * C3,), dtype=jnp.float32)
    abr = jax.random.normal(k4, (B3 * C3,), dtype=jnp.float32)
    outr = jax.block_until_ready(adaptive_instance_norm_2d(xr, awr, abr))
    refr = _adain_ref(xr, awr, abr)
    assert outr.shape == (B3, C3, H3, W3)
    assert jnp.allclose(outr, refr, atol=1e-3, rtol=1e-3)

    # 4) Force the two-pass spatial-split path (large-H*W fallback) with a tiny budget,
    #    on a shape whose H*W (480) needs a masked spatial tail.
    B2, C2, H2, W2 = 2, 4, 24, 20
    xs = jax.random.normal(k5, (B2, C2, H2, W2), dtype=jnp.float32)
    aw2 = jax.random.normal(k6, (B2 * C2,), dtype=jnp.float32)
    ab2 = jax.random.normal(k7, (B2 * C2,), dtype=jnp.float32)
    out2 = jax.block_until_ready(
        adaptive_instance_norm_2d(xs, aw2, ab2, block_budget_bytes=32 * 1024))
    ref2 = _adain_ref(xs, aw2, ab2)
    assert out2.shape == (B2, C2, H2, W2)
    assert jnp.allclose(out2, ref2, atol=2e-3, rtol=2e-3)

    print("KERNEL_OK")
</pallas_src>

<mosaic_0001>
module attributes {stable_mosaic.version = 11 : i64} {
  func.func @_linear_kernel(%arg0: i32, %arg1: i32, %arg2: i32, %arg3: memref<8x32xf32, #tpu.memory_space<vmem>>, %arg4: memref<32x64xf32, #tpu.memory_space<vmem>>, %arg5: memref<1x64xf32, #tpu.memory_space<vmem>>, %arg6: memref<8x64xf32, #tpu.memory_space<vmem>>, %arg7: memref<8x64xf32, #tpu.memory_space<vmem>>) attributes {dimension_semantics = [#tpu.dimension_semantics<parallel>, #tpu.dimension_semantics<parallel>, #tpu.dimension_semantics<arbitrary>], iteration_bounds = array<i64: 1, 1, 1>, scalar_prefetch = 0 : i64, scratch_operands = 1 : i64, tpu.core_type = #tpu.core_type<tc>, window_params = [{transform_indices = @transform_0, window_bounds = array<i64: 8, 32>}, {transform_indices = @transform_1, window_bounds = array<i64: 32, 64>}, {transform_indices = @transform_2, window_bounds = array<i64: 1, 64>}, {transform_indices = @transform_3, window_bounds = array<i64: 8, 64>}]} {
    %c0_i32 = arith.constant 0 : i32
    %0 = arith.cmpi eq, %arg2, %c0_i32 : i32
    %1 = arith.extui %0 : i1 to i32
    %c0_i32_0 = arith.constant 0 : i32
    %2 = arith.cmpi ne, %1, %c0_i32_0 : i32
    scf.if %2 {
      %cst_10 = arith.constant 0.000000e+00 : f32
      %12 = vector.broadcast %cst_10 : f32 to vector<8x64xf32>
      %c0_11 = arith.constant 0 : index
      %c0_12 = arith.constant 0 : index
      %13 = vector.load %arg7[%c0_11, %c0_12] : memref<8x64xf32, #tpu.memory_space<vmem>>, vector<8x64xf32>
      tpu.vector_store %arg7[%c0_11, %c0_12], %12 {strides = array<i32>} : memref<8x64xf32, #tpu.memory_space<vmem>>, vector<8x64xf32>,
    } else {
    }
    %c0 = arith.constant 0 : index
    %c0_1 = arith.constant 0 : index
    %3 = vector.load %arg3[%c0, %c0_1] : memref<8x32xf32, #tpu.memory_space<vmem>>, vector<8x32xf32>
    %c0_2 = arith.constant 0 : index
    %c0_3 = arith.constant 0 : index
    %4 = vector.load %arg4[%c0_2, %c0_3] : memref<32x64xf32, #tpu.memory_space<vmem>>, vector<32x64xf32>
    %c0_4 = arith.constant 0 : index
    %c0_5 = arith.constant 0 : index
    %5 = vector.load %arg7[%c0_4, %c0_5] : memref<8x64xf32, #tpu.memory_space<vmem>>, vector<8x64xf32>
    %cst = arith.constant dense<0.000000e+00> : vector<8x64xf32>
    %6 = tpu.matmul %3, %4, %cst {dimension_numbers = #tpu.dot_dimension_numbers<[1], [0], [0], [1], [0, 0, 1, 1], [], []>} : vector<8x32xf32>, vector<32x64xf32>, vector<8x64xf32> -> vector<8x64xf32>
    %7 = arith.addf %5, %6 : vector<8x64xf32>
    %c0_6 = arith.constant 0 : index
    %c0_7 = arith.constant 0 : index
    %8 = vector.load %arg7[%c0_6, %c0_7] : memref<8x64xf32, #tpu.memory_space<vmem>>, vector<8x64xf32>
    tpu.vector_store %arg7[%c0_6, %c0_7], %7 {strides = array<i32>} : memref<8x64xf32, #tpu.memory_space<vmem>>, vector<8x64xf32>,
    %c0_i32_8 = arith.constant 0 : i32
    %9 = arith.cmpi eq, %arg2, %c0_i32_8 : i32
    %10 = arith.extui %9 : i1 to i32
    %c0_i32_9 = arith.constant 0 : i32
    %11 = arith.cmpi ne, %10, %c0_i32_9 : i32
    scf.if %11 {
      %c0_10 = arith.constant 0 : index
      %c0_11 = arith.constant 0 : index
      %12 = vector.load %arg7[%c0_10, %c0_11] : memref<8x64xf32, #tpu.memory_space<vmem>>, vector<8x64xf32>
      %c0_12 = arith.constant 0 : index
      %c0_13 = arith.constant 0 : index
      %13 = vector.load %arg5[%c0_12, %c0_13] : memref<1x64xf32, #tpu.memory_space<vmem>>, vector<1x64xf32>
      %14 = vector.broadcast %13 : vector<1x64xf32> to vector<8x64xf32>
      %15 = arith.addf %12, %14 : vector<8x64xf32>
      %cst_14 = arith.constant 0.000000e+00 : f32
      %16 = vector.broadcast %cst_14 : f32 to vector<8x64xf32>
      %17 = arith.maximumf %15, %16 : vector<8x64xf32>
      %c0_15 = arith.constant 0 : index
      %c0_16 = arith.constant 0 : index
      %18 = vector.load %arg6[%c0_15, %c0_16] : memref<8x64xf32, #tpu.memory_space<vmem>>, vector<8x64xf32>
      tpu.vector_store %arg6[%c0_15, %c0_16], %17 {strides = array<i32>} : memref<8x64xf32, #tpu.memory_space<vmem>>, vector<8x64xf32>,
    } else {
    }
    return
  }
  func.func @transform_0(%arg0: i32, %arg1: i32, %arg2: i32) -> (i32, i32) {
    %c0_i32 = arith.constant 0 : i32
    return %arg0, %arg2 : i32, i32
  }
  func.func @transform_1(%arg0: i32, %arg1: i32, %arg2: i32) -> (i32, i32) {
    %c0_i32 = arith.constant 0 : i32
    return %arg2, %arg1 : i32, i32
  }
  func.func @transform_2(%arg0: i32, %arg1: i32, %arg2: i32) -> (i32, i32) {
    %c0_i32 = arith.constant 0 : i32
    %c0_i32_0 = arith.constant 0 : i32
    return %c0_i32, %arg1 : i32, i32
  }
  func.func @transform_3(%arg0: i32, %arg1: i32, %arg2: i32) -> (i32, i32) {
    %c0_i32 = arith.constant 0 : i32
    return %arg0, %arg1 : i32, i32
  }
}

</mosaic_0001>

<bundles_post_ra>
// kernel: tpu_custom_call.1
= control target key start
LH: loop header
LB: loop body
LE: loop exit
PB: predicated region body
PF: predicated region fallthrough
CT: control target
= control target key end

     0   :  { %8 = vsyncpa [#allocation4], 0  ;;  %s341_s0 = inlined_call_operand.hbm [shape: f32[8,32], index: 0, kind: input, shape index: {}]   ;;  %s342_s1 = inlined_call_operand.hbm [shape: f32[32,64], index: 1, kind: input, shape index: {}]   ;;  %s343_s2 = inlined_call_operand.vmem [shape: f32[1,64], index: 2, kind: input, shape index: {}]   ;;  %s344_s3 = inlined_call_operand.hbm [shape: f32[8,64], index: 3, kind: output, shape index: {}]  }
   0x1   :  { %9 = vsyncpa [#allocation7], 0 }
   0x2   :  { %10 = vsyncpa [#allocation5], 0  ;;  %s264_s12 = smov [#allocation3]   ;;  %s265_s14 = smov [#allocation6]  }
   0x3   :  { %s17_s13 = sshll.u32 %s264_s12, 4  ;;  %s26_s15 = sshll.u32 %s265_s14, 4  ;;  %s18_s13 = int_to_ptr.vmem [resolvable:$true] %s17_s13  ;;  %s292_s15 = int_to_ptr.vmem [resolvable:$true] %s26_s15 }
   0x4   :  { %s192_s18 = scalar_lea.hbm %s341_s0, 128 }
   0x5   :  { %p193_p0 = scmp.ne.s32.totalorder %s341_s0, %s192_s18  ;;  %p196_p1 = scmp.lt.u32.totalorder %s192_s18, %s341_s0 }
   0x7   :  { %p198_p2 = pnand %p196_p1, %p193_p0 }
   0x9   :  { %201 = shalt.err (!%p198_p2)
}
   0xa   :  { %s202_s23 = scalar_lea.vmem %s18_s13, 128  ;;  %p207_p4 = scmp.lt.s32.totalorder %s18_s13, %s18_s13 }
   0xb   :  { %p203_p3 = scmp.ne.s32.totalorder %s18_s13, %s202_s23  ;;  %p208_p5 = scmp.lt.s32.totalorder %s202_s23, %s202_s23 }
   0xd   :  { %p209_p6 = por %p208_p5, %p207_p4 }
   0xf   :  { %p210_p7 = pnand %p209_p6, %p203_p3 }
  0x11   :  { %213 = shalt.err (!%p210_p7)
}
  0x12   :  { %20 = dma.hbm_to_vmem [thread:$0]  %s341_s0, 128, %s18_s13, [#allocation4]  }
  0x13   :  { %s214_s28 = scalar_lea.hbm %s342_s1, 512 }
  0x14   :  { %p215_p8 = scmp.ne.s32.totalorder %s342_s1, %s214_s28  ;;  %p218_p9 = scmp.lt.u32.totalorder %s214_s28, %s342_s1 }
  0x16   :  { %p220_p10 = pnand %p218_p9, %p215_p8 }
  0x18   :  { %223 = shalt.err (!%p220_p10)
}
  0x19   :  { %s224_s6 = scalar_lea.vmem %s292_s15, 512  ;;  %p229_p12 = scmp.lt.s32.totalorder %s292_s15, %s292_s15 }
  0x1a   :  { %p225_p11 = scmp.ne.s32.totalorder %s292_s15, %s224_s6  ;;  %p230_p13 = scmp.lt.s32.totalorder %s224_s6, %s224_s6 }
  0x1c   :  { %p231_p0 = por %p230_p13, %p229_p12 }
  0x1e   :  { %p232_p1 = pnand %p231_p0, %p225_p11 }
  0x20   :  { %235 = shalt.err (!%p232_p1)
}
  0x21   :  { %s266_s0 = smov 128   ;;  %s267_s7 = smov 8  }
  0x22   :  { %32 = dma.hbm_to_vmem [thread:$0]  %s342_s1, 512, %s292_s15, [#allocation7], %s266_s0, %s266_s0, %s267_s7  }
  0x23   :  { %258 = dma.done.wait [#allocation4], 128  }
  0x24   :  { %259 = vsyncadd [#allocation4], 4294967168 }
  0x25   :  { %260 = dma.done.wait [#allocation7], 512  }
  0x26   :  { %261 = vsyncadd [#allocation7], 4294966784  ;;  %vm45_vm0 = vcmask 523264   ;;  %v268_v0 = vmov 0.0|0.0   ;;  %v269_v1 = vmov 0.0   ;;  %vm270_vm1 = vmmov 0  }
  0x27   :  { %178 = vmatprep.subr.bf16.mxu0 %v268_v0  ;;  %46 = vst.msk [vmem:[#allocation2] sm:$0xff] %vm45_vm0, %v269_v1  ;;  %175 = vmatprep.mubr.msk.f32.mxu0 %vm270_vm1, %v269_v1  ;;  %v48_v2 = vld [vmem:[#allocation6] sm:$0xff]  ;;  %v49_v3 = vld [vmem:[#allocation6 + $0x8] sm:$0xff]  ;;  %v50_v4 = vld [vmem:[#allocation6 + $0x10] sm:$0xff]  ;;  %vm53_vm2 = vcmask 261120   ;;  %s271_s11 = smov [#allocation8]  }
  0x28   :  { %v179_v5 = vpack.c.bf16 %v49_v3, %v48_v2  ;;  %v51_v6 = vld [vmem:[#allocation6 + $0x18] sm:$0xff]  ;;  %v161_v13 = vld [vmem:[%s343_s2] ss:$0 sm:$0xff]  ;;  %s150_s12 = sshll.u32 %s271_s11, 4  ;;  %s151_s12 = int_to_ptr.vmem [resolvable:$true] %s150_s12 }
  0x29   :  { %v182_v7 = vpack.c.bf16 %v51_v6, %v50_v4  ;;  %v47_v8 = vld [vmem:[#allocation3] sm:$0xff]  ;;  %s236_s13 = scalar_lea.vmem %s151_s12, 128  ;;  %p241_p3 = scmp.lt.s32.totalorder %s151_s12, %s151_s12 }
  0x2a   :  { %180 = vmatpush3.bf16.msra.mxu0 %v179_v5  ;;  %p237_p2 = scmp.ne.s32.totalorder %s151_s12, %s236_s13  ;;  %p242_p4 = scmp.lt.s32.totalorder %s236_s13, %s236_s13 }
  0x2b   :  { %181 = vmatprep.subr.bf16.mxu0 %v268_v0 }
  0x2c   :  { %p243_p5 = por %p242_p4, %p241_p3 }
  0x2e   :  { %183 = vmatpush3.bf16.msra.mxu0 %v182_v7  ;;  %v52_v9 = vld [vmem:[#allocation2] sm:$0xff]  ;;  %p244_p6 = pnand %p243_p5, %p237_p2 }
  0x31   :  { %176 = vmatmul.mubr.msk.f32.vlgmr.msra.gmra.mrb[0].mxu0 %vm53_vm2, %v47_v8 }
 0x104   :  { %v123_v10 = vpop.f32.mrb[0].mxu0 }
 0x105   :  { %v127_v11 = vadd.f32 %v123_v10, %v52_v9  ;;  %v177_v12 = vpop.f32.mrb[1].mxu0 }
 0x107   :  { %129 = vst.msk [vmem:[#allocation2] sm:$0xff] %vm45_vm0, %v127_v11 }
 0x10e   :  { %v133_v14 = vld [vmem:[#allocation2] sm:$0xff] }
 0x10f   :  { %v141_v15 = vadd.f32 %v161_v13, %v133_v14 }
 0x111   :  { %v142_v16 = vmax.f32 %v141_v15, 0.0 }
 0x113   :  { %143 = vst.msk [vmem:[#allocation8] sm:$0xff] %vm45_vm0, %v142_v16 }
 0x114   :  { %247 = shalt.err (!%p244_p6)
}
 0x115   :  { %s248_s16 = scalar_lea.hbm %s344_s3, 128 }
 0x116   :  { %p249_p7 = scmp.ne.s32.totalorder %s344_s3, %s248_s16  ;;  %p252_p8 = scmp.lt.u32.totalorder %s248_s16, %s344_s3 }
 0x118   :  { %p254_p9 = pnand %p252_p8, %p249_p7 }
 0x11a   :  { %257 = shalt.err (!%p254_p9)
}
 0x11b   :  { %153 = dma.vmem_to_hbm [thread:$0]  %s151_s12, 128, %s344_s3, [#allocation5]  }
 0x11c   :  { %262 = dma.done.wait [#allocation5], 128  }
 0x11d   :  { %263 = vsyncadd [#allocation5], 4294967168 }
 0x11e   :  { %157 = vsyncpa [#allocation4], 1 }
 0x11f   :  { %158 = vsyncpa [#allocation7], 1 }
 0x120   :  { %159 = vsyncpa [#allocation5], 1 }

</bundles_post_ra>
